<compile_context>
chip_gen: v6e
topology: v6e:2x2x1
jax: 0.10.0
libtpu: 0.0.40
codegen_flags: <defaults>
</compile_context>

<pallas_src>
import jax
import jax.numpy as jnp
from jax.experimental import pallas as pl
from jax.experimental.pallas import tpu as pltpu

EPS = 1e-8


def cosine_sim_kernel(p_ref, x_ref, ipn_ref, o_ref):
    # p_ref   : (OUT, IN)  Mem.param in its native PyTorch layout (IN on lanes)
    # x_ref   : (1, IN)    input row vector (sublane-broadcast over OUT rows)
    # ipn_ref : (OUT, 1)   precomputed 1 / max(||param[i]||, eps)   (static)
    # o_ref   : (OUT, 1)   cosine similarities
    p = p_ref[...]
    x = x_ref[...]

    # Per-row dot products: one VPU multiply + one XLU lane reduce.
    dots = jnp.sum(p * x, axis=-1, keepdims=True)            # (OUT, 1)

    # ||x|| handling: rsqrt(max(||x||^2, eps^2)) == 1 / max(||x||, eps)  (EUP).
    xn2 = jnp.sum(x * x)                                      # scalar
    inv_xn = jax.lax.rsqrt(jnp.maximum(xn2, jnp.float32(EPS * EPS)))

    o_ref[...] = dots * ipn_ref[...] * inv_xn


def init_inv_param_norm(param: jax.Array) -> jax.Array:
    """Hoisted once at init: 1 / max(||param[i]||, eps) as an (OUT, 1) column."""
    pn2 = jnp.sum(param * param, axis=-1, keepdims=True)      # (OUT, 1)
    return jax.lax.rsqrt(jnp.maximum(pn2, jnp.float32(EPS * EPS)))


def net_forward(param: jax.Array, inv_pnorm: jax.Array, x_row: jax.Array) -> jax.Array:
    """Net.forward.

    param     : (OUT, IN)  Mem.param (native layout)
    inv_pnorm : (OUT, 1)   precomputed at init by init_inv_param_norm
    x_row     : (1, IN)    input vector as a row (built once at the call site)
    returns   : (OUT,)     cosine similarities
    """
    out_size, _ = param.shape

    out = pl.pallas_call(
        cosine_sim_kernel,
        out_shape=jax.ShapeDtypeStruct((out_size, 1), jnp.float32),
        in_specs=[
            pl.BlockSpec(memory_space=pltpu.MemorySpace.VMEM),
            pl.BlockSpec(memory_space=pltpu.MemorySpace.VMEM),
            pl.BlockSpec(memory_space=pltpu.MemorySpace.VMEM),
        ],
        out_specs=pl.BlockSpec(memory_space=pltpu.MemorySpace.VMEM),
    )(param, x_row, inv_pnorm)

    # Single reshape to match the module's (OUT,) output signature.
    return out.reshape(out_size)


if __name__ == "__main__":
    INPUT_SIZE = 64
    OUTPUT_SIZE = 16

    key = jax.random.PRNGKey(0)
    k_param, k_x = jax.random.split(key)

    # nn.Parameter(torch.randn(output_size, input_size)) equivalent.
    param = jax.random.normal(k_param, (OUTPUT_SIZE, INPUT_SIZE), dtype=jnp.float32)
    # Build x directly in the (1, IN) kernel layout (no per-call reshape).
    x_row = jax.random.normal(k_x, (1, INPUT_SIZE), dtype=jnp.float32)

    # "At init": static per-row inverse norms (hoisted out of the forward pass).
    inv_pnorm = init_inv_param_norm(param)

    out = net_forward(param, inv_pnorm, x_row)
    out = jax.block_until_ready(out)

    # Pure-JAX reference: PyTorch cosine_similarity with per-norm eps clamp.
    x = x_row.reshape(INPUT_SIZE)
    dots_ref = param @ x
    denom_ref = jnp.maximum(jnp.linalg.norm(param, axis=1), EPS) * jnp.maximum(
        jnp.linalg.norm(x), EPS
    )
    ref = dots_ref / denom_ref

    assert out.shape == (OUTPUT_SIZE,)
    assert jnp.allclose(out, ref, atol=1e-5, rtol=1e-5), (out, ref)

    print("KERNEL_OK")
</pallas_src>

<mosaic_0001>
module attributes {stable_mosaic.version = 11 : i64} {
  func.func @cosine_sim_kernel(%arg0: memref<16x64xf32, #tpu.memory_space<vmem>>, %arg1: memref<1x64xf32, #tpu.memory_space<vmem>>, %arg2: memref<16x1xf32, #tpu.memory_space<vmem>>, %arg3: memref<16x1xf32, #tpu.memory_space<vmem>>) attributes {dimension_semantics = [], scalar_prefetch = 0 : i64, scratch_operands = 0 : i64, tpu.core_type = #tpu.core_type<tc>} {
    %c0 = arith.constant 0 : index
    %c0_0 = arith.constant 0 : index
    %0 = vector.load %arg0[%c0, %c0_0] : memref<16x64xf32, #tpu.memory_space<vmem>>, vector<16x64xf32>
    %c0_1 = arith.constant 0 : index
    %c0_2 = arith.constant 0 : index
    %1 = vector.load %arg1[%c0_1, %c0_2] : memref<1x64xf32, #tpu.memory_space<vmem>>, vector<1x64xf32>
    %2 = vector.broadcast %1 : vector<1x64xf32> to vector<16x64xf32>
    %3 = arith.mulf %0, %2 : vector<16x64xf32>
    %cst = arith.constant dense<0.000000e+00> : vector<16xf32>
    %4 = vector.multi_reduction <add>, %3, %cst [1] : vector<16x64xf32> to vector<16xf32>
    %5 = vector.shape_cast %4 : vector<16xf32> to vector<16x1xf32>
    %6 = arith.mulf %1, %1 : vector<1x64xf32>
    %7 = vector.shape_cast %6 : vector<1x64xf32> to vector<1x1x64xf32>
    %cst_3 = arith.constant dense<0.000000e+00> : vector<1xf32>
    %8 = vector.multi_reduction <add>, %7, %cst_3 [1, 2] : vector<1x1x64xf32> to vector<1xf32>
    %9 = vector.shape_cast %8 : vector<1xf32> to vector<1x1x1xf32>
    %10 = vector.extract %9[0, 0, 0] : f32 from vector<1x1x1xf32>
    %cst_4 = arith.constant 1.000000e-16 : f32
    %11 = arith.maximumf %10, %cst_4 : f32
    %12 = math.rsqrt %11 : f32
    %c0_5 = arith.constant 0 : index
    %c0_6 = arith.constant 0 : index
    %13 = vector.load %arg2[%c0_5, %c0_6] : memref<16x1xf32, #tpu.memory_space<vmem>>, vector<16x1xf32>
    %14 = arith.mulf %5, %13 : vector<16x1xf32>
    %15 = vector.broadcast %12 : f32 to vector<16x1xf32>
    %16 = arith.mulf %14, %15 : vector<16x1xf32>
    %c0_7 = arith.constant 0 : index
    %c0_8 = arith.constant 0 : index
    %17 = vector.load %arg3[%c0_7, %c0_8] : memref<16x1xf32, #tpu.memory_space<vmem>>, vector<16x1xf32>
    tpu.vector_store %arg3[%c0_7, %c0_8], %16 {strides = array<i32>} : memref<16x1xf32, #tpu.memory_space<vmem>>, vector<16x1xf32>,
    return
  }
}

</mosaic_0001>

<bundles_post_ra>
// kernel: tpu_custom_call.1
= control target key start
LH: loop header
LB: loop body
LE: loop exit
PB: predicated region body
PF: predicated region fallthrough
CT: control target
= control target key end

     0   :  { %v18_v0 = vlaneseq  ;;  %vm33_vm0 = vcmask 516096   ;;  %vm25_vm1 = vcmask 523264   ;;  %s69_s18 = smov 1e-16   ;;  %vm55_vm2 = vcmask 7168   ;;  %s111_s1 = inlined_call_operand.vmem [shape: f32[1,64], index: 1, kind: input, shape index: {}]   ;;  %s112_s0 = inlined_call_operand.vmem [shape: f32[16,64], index: 0, kind: input, shape index: {}]   ;;  %s113_s2 = inlined_call_operand.vmem [shape: f32[16,1], index: 2, kind: input, shape index: {}]   ;;  %s114_s3 = inlined_call_operand.vmem [shape: f32[16,1], index: 3, kind: output, shape index: {}]  }
   0x1   :  { %v16_v1 = vld [vmem:[%s111_s1] sm:$0x1]  ;;  %v15_v6 = vld [vmem:[%s112_s0 + $0x8] sm:$0xff] }
   0x2   :  { %v32_v2 = vmul.f32 %v16_v1, %v16_v1  ;;  %v19_v3 = vshrl.u32 %v18_v0, 7  ;;  %v14_v7 = vld [vmem:[%s112_s0] sm:$0xff]  ;;  %v49_v22 = vld [vmem:[%s113_s2 + $0x8] sm:$0xff] }
   0x3   :  { %v48_v24 = vld [vmem:[%s113_s2] sm:$0xff] }
   0x4   :  { %v34_v4 = vsel %vm33_vm0, %v32_v2, 0.0  ;;  %v20_v5 = vsub.s32 0, %v19_v3 }
   0x5   :  { %35 = vadd.xlane.f32.xlu0 %v34_v4 }
   0x6   :  { %v21_v8 = vrot.slane %v16_v1, %v20_v5 }
   0x8   :  { %v24_v9 = vmul.f32 %v21_v8, %v15_v6  ;;  %v23_v10 = vmul.f32 %v21_v8, %v14_v7 }
   0xa   :  { %v29_v11 = vsel %vm25_vm1, %v24_v9, 0.0  ;;  %v26_v12 = vsel %vm25_vm1, %v23_v10, 0.0 }
   0xb   :  { %30 = vadd.xlane.f32.xlu1 %v29_v11  ;;  %27 = vadd.xlane.f32.xlu0 %v26_v12 }
  0x8e   :  { %v36_v13 = vpop.xlane.xlu0 %35 }
  0x8f   :  { %v37_v14 = vrot.slane %v36_v13, 4 }
  0x91   :  { %v38_v15 = vadd.f32 %v37_v14, %v36_v13 }
  0x93   :  { %v39_v16 = vrot.slane %v38_v15, 2 }
  0x94   :  { %v31_v23 = vpop.xlane.xlu1 %30  ;;  %v28_v25 = vpop.xlane.xlu0 %27 }
  0x95   :  { %v40_v17 = vadd.f32 %v39_v16, %v38_v15  ;;  %v51_v26 = vmul.f32 %v49_v22, %v31_v23  ;;  %v50_v27 = vmul.f32 %v48_v24, %v28_v25 }
  0x97   :  { %v41_v18 = vrot.slane %v40_v17, 1 }
  0x99   :  { %v42_v19 = vadd.f32 %v41_v18, %v40_v17 }
  0x9b   :  { %62 = vpush %v42_v19 }
  0xcc   :  { %s63_s1 = spop %62 }
  0xcd   :  { %s44_s19 = smax.f32 %s69_s18, %s63_s1 }
  0xce   :  { %v45_v20 = vstv %s44_s19 }
  0xcf   :  { %67 = vrsqrt.f32 %v45_v20 }
  0xdc   :  { %v68_v21 = vpop.eup %67 }
  0xdd   :  { %64 = vpush %v68_v21 }
 0x10e   :  { %s65_s23 = spop %64 }
 0x10f   :  { %v52_v28 = vstv %s65_s23 }
 0x110   :  { %v53_v29 = vmul.f32 %v52_v28, %v50_v27  ;;  %v54_v30 = vmul.f32 %v52_v28, %v51_v26 }
 0x112   :  { %56 = vst.msk [vmem:[%s114_s3] sm:$0xff] %vm55_vm2, %v53_v29  ;;  %57 = vst.msk [vmem:[%s114_s3 + $0x8] sm:$0xff] %vm55_vm2, %v54_v30 }

</bundles_post_ra>
